<compile_context>
chip_gen: v5e
topology: v5e:2x2
jax: 0.10.0
libtpu: 0.0.40
codegen_flags: <defaults>
</compile_context>

<pallas_src>
import functools

import jax
import jax.numpy as jnp
from jax.experimental import pallas as pl
from jax.experimental.pallas import tpu as pltpu


def _pow_static(x, gamma):
    """x ** gamma with small integer gamma unrolled into multiplies (VPU only)."""
    g = float(gamma)
    if g == int(g) and 0.0 <= g <= 8.0:
        gi = int(g)
        if gi == 0:
            return jnp.ones_like(x)
        r = x
        for _ in range(gi - 1):
            r = r * x
        return r
    return jnp.power(x, g)


def _focal_loss_kernel(logit_ref, target_ref, pred_ref, alpha_ref,
                       loss_ref, acc_ref, loss_acc, count_acc,
                       *, gamma, eps, n_total, tile_n, num_classes):
    # logit_ref : (1, C, TILE_N) f32   lane-dense pixels, classes on sublanes
    # target_ref: (1, 1, TILE_N) i32
    # pred_ref  : (1, 1, TILE_N) i32
    # alpha_ref : (C,) f32 in SMEM     per-class weights (scalar reads)
    # loss_ref  : (1, 1, 1) f32        per-sample mean focal loss
    # acc_ref   : (1, 1, 1) f32        per-sample accuracy
    # loss_acc, count_acc: (1, 1) f32 VMEM scratch accumulators
    n_idx = pl.program_id(1)
    n_last = pl.num_programs(1) - 1

    @pl.when(n_idx == 0)
    def _():
        loss_acc[...] = jnp.zeros_like(loss_acc)
        count_acc[...] = jnp.zeros_like(count_acc)

    x = logit_ref[0]        # (C, TILE_N) f32
    t = target_ref[0]       # (1, TILE_N) i32
    pr = pred_ref[0]        # (1, TILE_N) i32

    # Numerically-stable softmax over the class (sublane) axis.
    m = jnp.max(x, axis=0, keepdims=True)        # (1, TILE_N)
    e = jnp.exp(x - m)                           # (C, TILE_N)
    s = jnp.sum(e, axis=0, keepdims=True)        # (1, TILE_N)

    # Gather exp(x_t - m) and alpha[t] via an unrolled per-class compare/select
    # (no (N, C) one-hot materialization, purely elementwise).
    e_t = jnp.zeros_like(s)
    a_t = jnp.zeros_like(s)
    for c in range(num_classes):
        sel = (t == c)
        e_t = jnp.where(sel, e[c:c + 1, :], e_t)
        a_t = jnp.where(sel, alpha_ref[c], a_t)

    # pt = softmax(x)[target] + eps  (single divide per pixel, not per class)
    pt = e_t / s + eps
    # NOTE: the PyTorch code applies alpha whenever alpha / logits sit on
    # different devices (the intended GPU path) -> we apply the alpha weight.
    logpt = a_t * jnp.log(pt)
    focal = _pow_static(1.0 - pt, gamma)
    loss_elem = -focal * logpt                   # (1, TILE_N)

    # Mask out padded lanes of a partial last tile.
    lane = jax.lax.broadcasted_iota(jnp.int32, (1, tile_n), 1)
    valid = (n_idx * tile_n + lane) < n_total
    loss_elem = jnp.where(valid, loss_elem, 0.0)
    correct = jnp.where(jnp.logical_and(valid, t == pr), 1.0, 0.0)

    loss_acc[...] = loss_acc[...] + jnp.sum(loss_elem, axis=1, keepdims=True)
    count_acc[...] = count_acc[...] + jnp.sum(correct, axis=1, keepdims=True)

    @pl.when(n_idx == n_last)
    def _():
        inv_n = 1.0 / n_total
        loss_ref[...] = (loss_acc[...] * inv_n).astype(loss_ref.dtype).reshape(1, 1, 1)
        acc_ref[...] = (count_acc[...] * inv_n).astype(acc_ref.dtype).reshape(1, 1, 1)


def _choose_tile_n(n):
    # Lane-dense tiles. 16384 lanes * (C + 2) * 4 B * 2 (double buffer) stays
    # well under the scoped-VMEM default on v5e/v6e/v7x while amortizing the
    # ~0.35 us per-grid-step overhead.
    cap = 16384
    if n <= cap:
        return n          # full-extent block is always a legal block shape
    return cap            # multiple of 128; partial last tile masked in-kernel


def focal_loss_ori(logit, pred, target, alpha, gamma=2.0, eps=1e-6):
    """Pallas implementation of FocalLoss_Ori.forward. Returns (loss[B], acc[B])."""
    B = logit.shape[0]
    C = logit.shape[1]
    if logit.ndim > 2:
        # NCHW -> (B, C, N): pure reshape, no transpose / HBM copy needed.
        logit2 = logit.reshape(B, C, -1)
    else:
        logit2 = logit.reshape(B, C, 1)
    N = logit2.shape[2]

    logit2 = logit2.astype(jnp.float32)
    target2 = target.reshape(B, 1, N).astype(jnp.int32)
    pred2 = pred.reshape(B, 1, N).astype(jnp.int32)
    alpha2 = jnp.asarray(alpha, dtype=jnp.float32).reshape(C)

    tile_n = _choose_tile_n(N)
    num_n = pl.cdiv(N, tile_n)

    kernel = functools.partial(
        _focal_loss_kernel,
        gamma=float(gamma), eps=float(eps),
        n_total=int(N), tile_n=int(tile_n), num_classes=int(C))

    loss, acc = pl.pallas_call(
        kernel,
        out_shape=(jax.ShapeDtypeStruct((B, 1, 1), jnp.float32),
                   jax.ShapeDtypeStruct((B, 1, 1), jnp.float32)),
        grid=(B, num_n),
        in_specs=[
            pl.BlockSpec((1, C, tile_n), lambda b, n: (b, 0, n)),
            pl.BlockSpec((1, 1, tile_n), lambda b, n: (b, 0, n)),
            pl.BlockSpec((1, 1, tile_n), lambda b, n: (b, 0, n)),
            pl.BlockSpec(memory_space=pltpu.MemorySpace.SMEM),
        ],
        out_specs=(
            pl.BlockSpec((1, 1, 1), lambda b, n: (b, 0, 0)),
            pl.BlockSpec((1, 1, 1), lambda b, n: (b, 0, 0)),
        ),
        scratch_shapes=[
            pltpu.VMEM((1, 1), jnp.float32),
            pltpu.VMEM((1, 1), jnp.float32),
        ],
        compiler_params=pltpu.CompilerParams(
            dimension_semantics=("parallel", "arbitrary")),
    )(logit2, target2, pred2, alpha2)

    return loss[:, 0, 0], acc[:, 0, 0]


def _reference(logit, pred, target, alpha, gamma=2.0, eps=1e-6):
    """Pure-JAX reference mirroring the PyTorch forward (with alpha applied)."""
    B, C = logit.shape[0], logit.shape[1]
    l2 = logit.reshape(B, C, -1).transpose(0, 2, 1).reshape(-1, C)
    p = jax.nn.softmax(l2.astype(jnp.float32), axis=-1)
    t = target.reshape(-1)
    pt = jnp.take_along_axis(p, t[:, None], axis=1)[:, 0] + eps
    logpt = jnp.log(pt)
    logpt = jnp.asarray(alpha, jnp.float32)[t] * logpt
    loss = -jnp.power(1.0 - pt, gamma) * logpt
    loss = loss.reshape(B, -1).mean(axis=-1)
    tgt = target.reshape(B, -1)
    prd = pred.reshape(B, -1)
    acc = jnp.sum((tgt == prd).astype(jnp.float32), axis=-1) / tgt.shape[-1]
    return loss, acc


if __name__ == "__main__":
    # Deterministic synthetic setup: num_class = 4, alpha list of length 4.
    num_class = 4
    gamma = 2.0
    alpha = jnp.array([0.1, 0.2, 0.3, 0.4], dtype=jnp.float32)

    B, C, H, W = 2, num_class, 16, 16
    key = jax.random.PRNGKey(0)
    k1, k2, k3 = jax.random.split(key, 3)
    logit = jax.random.normal(k1, (B, C, H, W), dtype=jnp.float32)
    target = jax.random.randint(k2, (B, H, W), 0, num_class, dtype=jnp.int32)
    pred = jax.random.randint(k3, (B, H, W), 0, num_class, dtype=jnp.int32)

    loss, acc = focal_loss_ori(logit, pred, target, alpha, gamma=gamma)
    loss = jax.block_until_ready(loss)
    acc = jax.block_until_ready(acc)

    ref_loss, ref_acc = _reference(logit, pred, target, alpha, gamma=gamma)
    assert jnp.allclose(loss, ref_loss, rtol=1e-5, atol=1e-5), (loss, ref_loss)
    assert jnp.allclose(acc, ref_acc, rtol=1e-5, atol=1e-5), (acc, ref_acc)

    print("KERNEL_OK")
</pallas_src>

<mosaic_0001>
module attributes {stable_mosaic.version = 11 : i64} {
  func.func @_focal_loss_kernel(%arg0: i32, %arg1: i32, %arg2: memref<1x4x256xf32, #tpu.memory_space<vmem>>, %arg3: memref<1x1x256xi32, #tpu.memory_space<vmem>>, %arg4: memref<1x1x256xi32, #tpu.memory_space<vmem>>, %arg5: memref<4xf32, #tpu.memory_space<smem>>, %arg6: memref<1x1x1xf32, #tpu.memory_space<vmem>>, %arg7: memref<1x1x1xf32, #tpu.memory_space<vmem>>, %arg8: memref<1x1xf32, #tpu.memory_space<vmem>>, %arg9: memref<1x1xf32, #tpu.memory_space<vmem>>) attributes {dimension_semantics = [#tpu.dimension_semantics<parallel>, #tpu.dimension_semantics<arbitrary>], iteration_bounds = array<i64: 2, 1>, scalar_prefetch = 0 : i64, scratch_operands = 2 : i64, tpu.core_type = #tpu.core_type<tc>, window_params = [{transform_indices = @transform_0, window_bounds = array<i64: 1, 4, 256>}, {transform_indices = @transform_1, window_bounds = array<i64: 1, 1, 256>}, {transform_indices = @transform_2, window_bounds = array<i64: 1, 1, 256>}, {transform_indices = @transform_3, window_bounds = array<i64: 4>}, {transform_indices = @transform_4, window_bounds = array<i64: 1, 1, 1>}, {transform_indices = @transform_5, window_bounds = array<i64: 1, 1, 1>}]} {
    %c0_i32 = arith.constant 0 : i32
    %0 = arith.cmpi eq, %arg1, %c0_i32 : i32
    %1 = arith.extui %0 : i1 to i32
    %c0_i32_0 = arith.constant 0 : i32
    %2 = arith.cmpi ne, %1, %c0_i32_0 : i32
    scf.if %2 {
      %cst_33 = arith.constant 0.000000e+00 : f32
      %83 = vector.broadcast %cst_33 : f32 to vector<1x1xf32>
      %c0_34 = arith.constant 0 : index
      %c0_35 = arith.constant 0 : index
      %84 = vector.load %arg8[%c0_34, %c0_35] : memref<1x1xf32, #tpu.memory_space<vmem>>, vector<1x1xf32>
      tpu.vector_store %arg8[%c0_34, %c0_35], %83 {strides = array<i32>} : memref<1x1xf32, #tpu.memory_space<vmem>>, vector<1x1xf32>,
      %cst_36 = arith.constant 0.000000e+00 : f32
      %85 = vector.broadcast %cst_36 : f32 to vector<1x1xf32>
      %c0_37 = arith.constant 0 : index
      %c0_38 = arith.constant 0 : index
      %86 = vector.load %arg9[%c0_37, %c0_38] : memref<1x1xf32, #tpu.memory_space<vmem>>, vector<1x1xf32>
      tpu.vector_store %arg9[%c0_37, %c0_38], %85 {strides = array<i32>} : memref<1x1xf32, #tpu.memory_space<vmem>>, vector<1x1xf32>,
    } else {
    }
    %c0 = arith.constant 0 : index
    %c0_1 = arith.constant 0 : index
    %c0_2 = arith.constant 0 : index
    %3 = vector.load %arg2[%c0, %c0_1, %c0_2] : memref<1x4x256xf32, #tpu.memory_space<vmem>>, vector<1x4x256xf32>
    %4 = vector.shape_cast %3 : vector<1x4x256xf32> to vector<4x256xf32>
    %c0_3 = arith.constant 0 : index
    %c0_4 = arith.constant 0 : index
    %c0_5 = arith.constant 0 : index
    %5 = vector.load %arg3[%c0_3, %c0_4, %c0_5] : memref<1x1x256xi32, #tpu.memory_space<vmem>>, vector<1x1x256xi32>
    %6 = vector.shape_cast %5 : vector<1x1x256xi32> to vector<1x256xi32>
    %c0_6 = arith.constant 0 : index
    %c0_7 = arith.constant 0 : index
    %c0_8 = arith.constant 0 : index
    %7 = vector.load %arg4[%c0_6, %c0_7, %c0_8] : memref<1x1x256xi32, #tpu.memory_space<vmem>>, vector<1x1x256xi32>
    %8 = vector.shape_cast %7 : vector<1x1x256xi32> to vector<1x256xi32>
    %cst = arith.constant dense<0xFF800000> : vector<256xf32>
    %9 = vector.multi_reduction <maximumf>, %4, %cst [0] : vector<4x256xf32> to vector<256xf32>
    %10 = vector.shape_cast %9 : vector<256xf32> to vector<1x256xf32>
    %11 = vector.broadcast %10 : vector<1x256xf32> to vector<4x256xf32>
    %12 = arith.subf %4, %11 : vector<4x256xf32>
    %13 = math.exp %12 : vector<4x256xf32>
    %cst_9 = arith.constant dense<0.000000e+00> : vector<256xf32>
    %14 = vector.multi_reduction <add>, %13, %cst_9 [0] : vector<4x256xf32> to vector<256xf32>
    %15 = vector.shape_cast %14 : vector<256xf32> to vector<1x256xf32>
    %cst_10 = arith.constant 0.000000e+00 : f32
    %16 = vector.broadcast %cst_10 : f32 to vector<1x256xf32>
    %cst_11 = arith.constant 0.000000e+00 : f32
    %17 = vector.broadcast %cst_11 : f32 to vector<1x256xf32>
    %c0_i32_12 = arith.constant 0 : i32
    %18 = vector.broadcast %c0_i32_12 : i32 to vector<1x256xi32>
    %19 = arith.cmpi eq, %6, %18 : vector<1x256xi32>
    %20 = vector.extract_strided_slice %13 {offsets = [0, 0], sizes = [1, 256], strides = [1, 1]} : vector<4x256xf32> to vector<1x256xf32>
    %21 = arith.select %19, %20, %16 : vector<1x256xi1>, vector<1x256xf32>
    %c0_13 = arith.constant 0 : index
    %22 = memref.load %arg5[%c0_13] : memref<4xf32, #tpu.memory_space<smem>>
    %23 = vector.broadcast %22 : f32 to vector<1x256xf32>
    %24 = arith.select %19, %23, %17 : vector<1x256xi1>, vector<1x256xf32>
    %c1_i32 = arith.constant 1 : i32
    %25 = vector.broadcast %c1_i32 : i32 to vector<1x256xi32>
    %26 = arith.cmpi eq, %6, %25 : vector<1x256xi32>
    %27 = vector.extract_strided_slice %13 {offsets = [1, 0], sizes = [1, 256], strides = [1, 1]} : vector<4x256xf32> to vector<1x256xf32>
    %28 = arith.select %26, %27, %21 : vector<1x256xi1>, vector<1x256xf32>
    %c1 = arith.constant 1 : index
    %29 = memref.load %arg5[%c1] : memref<4xf32, #tpu.memory_space<smem>>
    %30 = vector.broadcast %29 : f32 to vector<1x256xf32>
    %31 = arith.select %26, %30, %24 : vector<1x256xi1>, vector<1x256xf32>
    %c2_i32 = arith.constant 2 : i32
    %32 = vector.broadcast %c2_i32 : i32 to vector<1x256xi32>
    %33 = arith.cmpi eq, %6, %32 : vector<1x256xi32>
    %34 = vector.extract_strided_slice %13 {offsets = [2, 0], sizes = [1, 256], strides = [1, 1]} : vector<4x256xf32> to vector<1x256xf32>
    %35 = arith.select %33, %34, %28 : vector<1x256xi1>, vector<1x256xf32>
    %c2 = arith.constant 2 : index
    %36 = memref.load %arg5[%c2] : memref<4xf32, #tpu.memory_space<smem>>
    %37 = vector.broadcast %36 : f32 to vector<1x256xf32>
    %38 = arith.select %33, %37, %31 : vector<1x256xi1>, vector<1x256xf32>
    %c3_i32 = arith.constant 3 : i32
    %39 = vector.broadcast %c3_i32 : i32 to vector<1x256xi32>
    %40 = arith.cmpi eq, %6, %39 : vector<1x256xi32>
    %41 = vector.extract_strided_slice %13 {offsets = [3, 0], sizes = [1, 256], strides = [1, 1]} : vector<4x256xf32> to vector<1x256xf32>
    %42 = arith.select %40, %41, %35 : vector<1x256xi1>, vector<1x256xf32>
    %c3 = arith.constant 3 : index
    %43 = memref.load %arg5[%c3] : memref<4xf32, #tpu.memory_space<smem>>
    %44 = vector.broadcast %43 : f32 to vector<1x256xf32>
    %45 = arith.select %40, %44, %38 : vector<1x256xi1>, vector<1x256xf32>
    %46 = arith.divf %42, %15 : vector<1x256xf32>
    %cst_14 = arith.constant 9.99999997E-7 : f32
    %47 = vector.broadcast %cst_14 : f32 to vector<1x256xf32>
    %48 = arith.addf %46, %47 : vector<1x256xf32>
    %49 = math.log %48 : vector<1x256xf32>
    %50 = arith.mulf %45, %49 : vector<1x256xf32>
    %cst_15 = arith.constant 1.000000e+00 : f32
    %51 = vector.broadcast %cst_15 : f32 to vector<1x256xf32>
    %52 = arith.subf %51, %48 : vector<1x256xf32>
    %53 = arith.mulf %52, %52 : vector<1x256xf32>
    %cst_16 = arith.constant 0.000000e+00 : f32
    %54 = vector.broadcast %cst_16 : f32 to vector<1x256xf32>
    %55 = arith.subf %54, %53 : vector<1x256xf32>
    %56 = arith.mulf %55, %50 : vector<1x256xf32>
    %57 = tpu.iota {dimensions = array<i32: 1>} : vector<1x256xi32>
    %c256_i32 = arith.constant 256 : i32
    %58 = arith.muli %arg1, %c256_i32 : i32
    %59 = vector.broadcast %58 : i32 to vector<1x256xi32>
    %60 = arith.addi %59, %57 : vector<1x256xi32>
    %c256_i32_17 = arith.constant 256 : i32
    %61 = vector.broadcast %c256_i32_17 : i32 to vector<1x256xi32>
    %62 = arith.cmpi slt, %60, %61 : vector<1x256xi32>
    %cst_18 = arith.constant 0.000000e+00 : f32
    %63 = vector.broadcast %cst_18 : f32 to vector<1x256xf32>
    %64 = arith.select %62, %56, %63 : vector<1x256xi1>, vector<1x256xf32>
    %65 = arith.cmpi eq, %6, %8 : vector<1x256xi32>
    %66 = arith.andi %62, %65 : vector<1x256xi1>
    %cst_19 = arith.constant 1.000000e+00 : f32
    %cst_20 = arith.constant 0.000000e+00 : f32
    %67 = vector.broadcast %cst_19 : f32 to vector<1x256xf32>
    %68 = vector.broadcast %cst_20 : f32 to vector<1x256xf32>
    %69 = arith.select %66, %67, %68 : vector<1x256xi1>, vector<1x256xf32>
    %c0_21 = arith.constant 0 : index
    %c0_22 = arith.constant 0 : index
    %70 = vector.load %arg8[%c0_21, %c0_22] : memref<1x1xf32, #tpu.memory_space<vmem>>, vector<1x1xf32>
    %cst_23 = arith.constant dense<0.000000e+00> : vector<1xf32>
    %71 = vector.multi_reduction <add>, %64, %cst_23 [1] : vector<1x256xf32> to vector<1xf32>
    %72 = vector.shape_cast %71 : vector<1xf32> to vector<1x1xf32>
    %73 = arith.addf %70, %72 : vector<1x1xf32>
    %c0_24 = arith.constant 0 : index
    %c0_25 = arith.constant 0 : index
    %74 = vector.load %arg8[%c0_24, %c0_25] : memref<1x1xf32, #tpu.memory_space<vmem>>, vector<1x1xf32>
    tpu.vector_store %arg8[%c0_24, %c0_25], %73 {strides = array<i32>} : memref<1x1xf32, #tpu.memory_space<vmem>>, vector<1x1xf32>,
    %c0_26 = arith.constant 0 : index
    %c0_27 = arith.constant 0 : index
    %75 = vector.load %arg9[%c0_26, %c0_27] : memref<1x1xf32, #tpu.memory_space<vmem>>, vector<1x1xf32>
    %cst_28 = arith.constant dense<0.000000e+00> : vector<1xf32>
    %76 = vector.multi_reduction <add>, %69, %cst_28 [1] : vector<1x256xf32> to vector<1xf32>
    %77 = vector.shape_cast %76 : vector<1xf32> to vector<1x1xf32>
    %78 = arith.addf %75, %77 : vector<1x1xf32>
    %c0_29 = arith.constant 0 : index
    %c0_30 = arith.constant 0 : index
    %79 = vector.load %arg9[%c0_29, %c0_30] : memref<1x1xf32, #tpu.memory_space<vmem>>, vector<1x1xf32>
    tpu.vector_store %arg9[%c0_29, %c0_30], %78 {strides = array<i32>} : memref<1x1xf32, #tpu.memory_space<vmem>>, vector<1x1xf32>,
    %c0_i32_31 = arith.constant 0 : i32
    %80 = arith.cmpi eq, %arg1, %c0_i32_31 : i32
    %81 = arith.extui %80 : i1 to i32
    %c0_i32_32 = arith.constant 0 : i32
    %82 = arith.cmpi ne, %81, %c0_i32_32 : i32
    scf.if %82 {
      %c0_33 = arith.constant 0 : index
      %c0_34 = arith.constant 0 : index
      %83 = vector.load %arg8[%c0_33, %c0_34] : memref<1x1xf32, #tpu.memory_space<vmem>>, vector<1x1xf32>
      %cst_35 = arith.constant 3.906250e-03 : f32
      %84 = vector.broadcast %cst_35 : f32 to vector<1x1xf32>
      %85 = arith.mulf %83, %84 : vector<1x1xf32>
      %86 = vector.shape_cast %85 : vector<1x1xf32> to vector<1x1x1xf32>
      %c0_36 = arith.constant 0 : index
      %c0_37 = arith.constant 0 : index
      %c0_38 = arith.constant 0 : index
      %87 = vector.load %arg6[%c0_36, %c0_37, %c0_38] : memref<1x1x1xf32, #tpu.memory_space<vmem>>, vector<1x1x1xf32>
      tpu.vector_store %arg6[%c0_36, %c0_37, %c0_38], %86 {strides = array<i32>} : memref<1x1x1xf32, #tpu.memory_space<vmem>>, vector<1x1x1xf32>,
      %c0_39 = arith.constant 0 : index
      %c0_40 = arith.constant 0 : index
      %88 = vector.load %arg9[%c0_39, %c0_40] : memref<1x1xf32, #tpu.memory_space<vmem>>, vector<1x1xf32>
      %cst_41 = arith.constant 3.906250e-03 : f32
      %89 = vector.broadcast %cst_41 : f32 to vector<1x1xf32>
      %90 = arith.mulf %88, %89 : vector<1x1xf32>
      %91 = vector.shape_cast %90 : vector<1x1xf32> to vector<1x1x1xf32>
      %c0_42 = arith.constant 0 : index
      %c0_43 = arith.constant 0 : index
      %c0_44 = arith.constant 0 : index
      %92 = vector.load %arg7[%c0_42, %c0_43, %c0_44] : memref<1x1x1xf32, #tpu.memory_space<vmem>>, vector<1x1x1xf32>
      tpu.vector_store %arg7[%c0_42, %c0_43, %c0_44], %91 {strides = array<i32>} : memref<1x1x1xf32, #tpu.memory_space<vmem>>, vector<1x1x1xf32>,
    } else {
    }
    return
  }
  func.func @transform_0(%arg0: i32, %arg1: i32) -> (i32, i32, i32) {
    %c0_i32 = arith.constant 0 : i32
    %c0_i32_0 = arith.constant 0 : i32
    return %arg0, %c0_i32, %arg1 : i32, i32, i32
  }
  func.func @transform_1(%arg0: i32, %arg1: i32) -> (i32, i32, i32) {
    %c0_i32 = arith.constant 0 : i32
    %c0_i32_0 = arith.constant 0 : i32
    return %arg0, %c0_i32, %arg1 : i32, i32, i32
  }
  func.func @transform_2(%arg0: i32, %arg1: i32) -> (i32, i32, i32) {
    %c0_i32 = arith.constant 0 : i32
    %c0_i32_0 = arith.constant 0 : i32
    return %arg0, %c0_i32, %arg1 : i32, i32, i32
  }
  func.func @transform_3(%arg0: i32, %arg1: i32) -> i32 {
    %c0_i32 = arith.constant 0 : i32
    %c0_i32_0 = arith.constant 0 : i32
    return %c0_i32 : i32
  }
  func.func @transform_4(%arg0: i32, %arg1: i32) -> (i32, i32, i32) {
    %c0_i32 = arith.constant 0 : i32
    %c0_i32_0 = arith.constant 0 : i32
    %c0_i32_1 = arith.constant 0 : i32
    return %arg0, %c0_i32, %c0_i32_0 : i32, i32, i32
  }
  func.func @transform_5(%arg0: i32, %arg1: i32) -> (i32, i32, i32) {
    %c0_i32 = arith.constant 0 : i32
    %c0_i32_0 = arith.constant 0 : i32
    %c0_i32_1 = arith.constant 0 : i32
    return %arg0, %c0_i32, %c0_i32_0 : i32, i32, i32
  }
}

</mosaic_0001>

<bundles_post_ra>
// kernel: tpu_custom_call.1
= control target key start
LH: loop header
LB: loop body
LE: loop exit
PB: predicated region body
PF: predicated region fallthrough
CT: control target
= control target key end

     0   :  { %s1181_s0 = inlined_call_operand.hbm [shape: f32[2,4,256], index: 0, kind: input, shape index: {}]   ;;  %s1182_s1 = inlined_call_operand.hbm [shape: s32[2,1,256], index: 1, kind: input, shape index: {}]   ;;  %s1183_s2 = inlined_call_operand.hbm [shape: s32[2,1,256], index: 2, kind: input, shape index: {}]   ;;  %s1184_s3 = inlined_call_operand.vmem [shape: f32[4], index: 3, kind: input, shape index: {}]   ;;  %s1185_s4 = inlined_call_operand.vmem [shape: f32[2,1,1], index: 4, kind: output, shape index: {0}]   ;;  %s1186_s5 = inlined_call_operand.vmem [shape: f32[2,1,1], index: 5, kind: output, shape index: {1}]  }
   0x1   :  { %1190 = sst [smem:[#allocation15_spill]] %s1182_s1 }
   0x2   :  { %1191 = sst [smem:[#allocation16_spill]] %s1183_s2 }
   0x3   :  { %1192 = sst [smem:[#allocation17_spill]] %s1184_s3 }
   0x4   :  { %11 = vsyncpa [#allocation5], 0 }
   0x5   :  { %13 = vsyncpa [#allocation5 + $0x1], 0 }
   0x6   :  { %14 = vsyncpa [#allocation8], 0 }
   0x7   :  { %16 = vsyncpa [#allocation8 + $0x1], 0 }
   0x8   :  { %17 = vsyncpa [#allocation6], 0  ;;  %s1000_s18 = smov 0   ;;  %s1002_s19 = smov 0  }
   0x9   :  { %s1004_s20 = smov 0   ;;  %s1006_s21 = smov 0  }
   0xa   :  { %s1008_s22 = smov 0   ;;  %s1010_s23 = smov 0  }
   0xb LB: > { %s35_s24 = sadd.s32 1, %s961_s22  ;;  %s44_s25 = sadd.s32 1, %s953_s20  ;;  %s965_s23 = sphi %s1010_s23, %s23_s23   ;;  %s961_s22 = sphi %s1008_s22, %s1208_s22   ;;  %s957_s21 = sphi %s1006_s21, %s1207_s21   ;;  %s953_s20 = sphi %s1004_s20, %s1206_s20   ;;  %s949_s19 = sphi %s1002_s19, %s1205_s19   ;;  %s945_s18 = sphi %s1000_s18, %s1204_s18  }
   0xc   : > { %p37_p0 = scmp.ge.s32.totalorder %s35_s24, 2  ;;  %p51_p1 = scmp.ne.s32.totalorder %s953_s20, %s949_s19 }
   0xd   : > { %p52_p2 = scmp.eq.s32.totalorder %s965_s23, 0  ;;  %p743_p4 = scmp.lt.s32.totalorder %s965_s23, 2 }
   0xe   : > { %s1210_s24 = smov (%p37_p0, %s35_s24), 0  ;;  %s1041_s27 = sand.u32 1, %s953_s20  }
   0xf   : > { %1193 = sst [smem:[#allocation14_spill]] %s1210_s24  ;;  %p53_p3 = por %p52_p2, %p51_p1 }
  0x10   : > { %s39_s26 = ssub.s32 %s961_s22, %s1210_s24  ;;  %s242_s29 = sand.u32 1, %s965_s23  }
  0x11   : > { %p42_p5 = scmp.eq.s32.totalorder %s39_s26, 0  ;;  %p1043_p6 = pnand %p743_p4, %p53_p3 }
  0x12   : > { %s1188_s30 = sshll.u32 %s1041_s27, 1  ;;  %s704_s7 = sshll.u32 %s961_s22, 1 }
  0x13   : > { %s1050_s6 = scalar_select %p42_p5, %s953_s20, %s44_s25  }
  0x14   : > { %s1195_s1 = sld [smem:[#allocation15_spill]]  ;;  %s246_s11 = scalar_lea.vmem [#allocation7], %s1188_s30 }
  0x15   : > { %s256_s12 = sshll.u32 %s246_s11, 4  ;;  %s1058_s14 = scalar_lea.sflag [#allocation8], %s242_s29  ;;  %s257_s12 = int_to_ptr.vmem [resolvable:$true] %s256_s12 }
  0x16   : > { %s1196_s2 = sld [smem:[#allocation16_spill]]  ;;  %s1187_s25 = sadd.s32 4294967295, %s965_s23  }
  0x17   : > { %p57_p7 = scmp.ne.s32.totalorder %s949_s19, %s945_s18  ;;  %p1071_p8 = scmp.eq.s32.totalorder %s1187_s25, 0 }
  0x18   : > { %p697_p9 = scmp.ge.s32.totalorder %s965_s23, 1  ;;  %p197_p10 = scmp.lt.s32.totalorder %s965_s23, 3 }
  0x19   : > { %p1079_p11 = por %p1071_p8, %p57_p7  ;;  %s1200_s3 = sld [smem:[#allocation17_spill]] }
  0x1a   : > { %s252_s10 = scalar_lea.hbm %s1195_s1, %s704_s7  ;;  %p1083_p12 = pnand %p697_p9, %p197_p10 }
  0x1b   : > { %s254_s13 = sshll.u32 %s252_s10, 4  ;;  %s700_s10 = sshll.u32 %s1041_s27, 3  ;;  %s255_s13 = int_to_ptr.hbm [resolvable:$true] %s254_s13 }
  0x1c   : > { %738 = dma.hbm_to_vmem [thread:$0]  (!%p1043_p6), %s255_s13, 32, %s257_s12, %s1058_s14  }
  0x1d   : > { %s273_s17 = scalar_lea.hbm %s1196_s2, %s704_s7  ;;  %p728_p13 = pneg %p1083_p12 }
  0x1e   : > { %s717_s11 = sshll.u32 %s961_s22, 3  ;;  %s224_s16 = scalar_lea.vmem [#allocation4], %s700_s10 }
  0x1f   : > { %s209_s9 = sshll.u32 %s1200_s3, 4  ;;  %p729_p0 = pnand %p728_p13, %p1071_p8  ;;  %s210_s9 = int_to_ptr.vmem [resolvable:$true] %s209_s9 }
  0x20   : > { %s231_s15 = scalar_lea.hbm %s1181_s0, %s717_s11  ;;  %s235_s25 = sshll.u32 %s224_s16, 4  ;;  %s236_s25 = int_to_ptr.vmem [resolvable:$true] %s235_s25 }
  0x21   : > { %s233_s18 = sshll.u32 %s231_s15, 4  ;;  %s967_s7 = smov [#allocation10]   ;;  %s234_s18 = int_to_ptr.hbm [resolvable:$true] %s233_s18 }
  0x22   : > { %731 = dma.vmem_to_smem (!%p729_p0), %s210_s9, 16, %s967_s7, [#allocation6]  }
  0x23   : > { %s221_s30 = scalar_lea.sflag [#allocation5], %s1041_s27  ;;  %s275_s1 = sshll.u32 %s273_s17, 4  ;;  %s276_s1 = int_to_ptr.hbm [resolvable:$true] %s275_s1 }
  0x24   : > { %735 = dma.hbm_to_vmem [thread:$0]  (!%p1043_p6), %s234_s18, 128, %s236_s25, %s221_s30  }
  0x25   : > { %s1201_s2 = sshll.u32 %s1041_s27, 1  ;;  %286 = sbr.rel (%p1083_p12) target bundleno = 287 (0x11f), region = 36 }
  0x26   : > { %s267_s3 = scalar_lea.vmem [#allocation9], %s1201_s2  ;;  %s288_s10 = sand.u32 (!%p1083_p12), 1, %s949_s19  }
  0x27   : > { %s277_s24 = sshll.u32 %s267_s3, 4  ;;  %s708_s9 = sshll.u32 (!%p1083_p12), %s288_s10, 3  ;;  %s278_s24 = int_to_ptr.vmem [resolvable:$true] %s277_s24 }
  0x28   : > { %741 = dma.hbm_to_vmem [thread:$0]  (!%p1043_p6), %s276_s1, 32, %s278_s24, %s1058_s14  }
  0x29   : > { %s289_s11 = scalar_lea.sflag (!%p1083_p12), [#allocation5], %s288_s10  ;;  %s292_s12 = scalar_lea.vmem (!%p1083_p12), [#allocation4], %s708_s9 }
  0x2a   : > { %932 = dma.done.wait (%p1079_p11), %s289_s11, 128  }
  0x2b   : > { %934 = vsyncadd (%p1079_p11), %s289_s11, 4294967168  ;;  %s1202_s2 = sadd.s32 4294967295, %s965_s23   ;;  %s709_s27 = sshll.u32 %s288_s10, 1 }
  0x2c   : > { %s298_s3 = sand.u32 1, %s1202_s2   ;;  %s1116_s24 = scalar_lea.vmem [#allocation7], %s709_s27 }
  0x2d   : > { %s299_s1 = scalar_lea.sflag [#allocation8], %s298_s3 }
  0x2e   : > { %936 = dma.done.wait (%p1079_p11), %s299_s1, 64  }
  0x2f   : > { %938 = vsyncadd (%p1079_p11), %s299_s1, 4294967232  ;;  %s1122_s28 = scalar_lea.vmem [#allocation9], %s709_s27 }
  0x30   : > { %940 = dma.done.wait (%p1071_p8), [#allocation6], 16  }
  0x31   : > { %942 = vsyncadd (%p1071_p8), [#allocation6], 4294967280 }
  0x32   : > { %323 = sfence }
  0x33   : > { %v373_v0 = vld [vmem:[%s292_s12] sm:$0xff]  ;;  %vm382_vm0 = vcmask 1043456   ;;  %vm427_vm1 = vcmask 1040384   ;;  %v374_v41 = vld [vmem:[%s1116_s24] sm:$0x3]  ;;  %s431_s30 = sld [smem:[#allocation10]] }
  0x34   : > { %377 = vst [vmem:[#allocation1] ss:$2 sm:$0xff] %v373_v0  ;;  %vm425_vm2 = vcmp.eq.s32.totalorder %v374_v41, 0  ;;  %vm434_vm3 = vcmp.eq.s32.totalorder %v374_v41, 1  ;;  %vm443_vm4 = vcmp.eq.s32.totalorder %v374_v41, 2  ;;  %s712_s14 = sld [smem:[#allocation10 + $0x1]] }
  0x35   : > { %vm452_vm7 = vcmp.eq.s32.totalorder %v374_v41, 3  ;;  %s713_s17 = sld [smem:[#allocation10 + $0x2]]  ;;  %vm370_vm13 = vcmask 0   ;;  %p360_p1 = scmp.lt.s32.totalorder %s957_s21, 1 }
  0x36   : > { %s714_s25 = sld [smem:[#allocation10 + $0x3]] }
  0x37   : > { %s1212_s21 = smov (!%p360_p1, %s957_s21), 1 }
  0x38   : > { %s362_s8 = scalar_lea.vmem %s1185_s4, %s1212_s21  ;;  %s365_s16 = scalar_lea.vmem %s1186_s5, %s1212_s21 }
  0x39   : > { %v432_v57 = vstv %s431_s30 }
  0x3a   : > { %v433_v61 = vsel %vm425_vm2, %v432_v57, 0.0  ;;  %v441_v62 = vstv %s712_s14 }
  0x3b   : > { %v378_v1 = vld.sshfl [vmem:[#allocation1] sm:$0xff pattern:$0x75316420]  ;;  %v379_v2 = vld.sshfl [vmem:[#allocation1 + $0x8] sm:$0xff pattern:$0x75316420] }
  0x3c   : > { %v383_v3 = vsel %vm382_vm0, %v378_v1, -inf  ;;  %v390_v4 = vsel %vm382_vm0, %v379_v2, -inf  ;;  %v442_v1 = vsel %vm434_vm3, %v441_v62, %v433_v61  ;;  %v450_v2 = vstv %s713_s17 }
  0x3d   : > { %v384_v5 = vrot.slane %v383_v3, 4  ;;  %v391_v6 = vrot.slane %v390_v4, 4 }
  0x3f   : > { %v385_v7 = vmax.f32 %v383_v3, %v384_v5  ;;  %v392_v8 = vmax.f32 %v390_v4, %v391_v6  ;;  %v375_v4 = vld [vmem:[%s1122_s28] sm:$0x3]  ;;  %v451_v5 = vsel %vm443_vm4, %v450_v2, %v442_v1  ;;  %v459_v6 = vstv %s714_s25 }
  0x40   : > { %vm505_vm10 = vcmp.eq.s32.totalorder %v374_v41, %v375_v4 }
  0x41   : > { %v386_v9 = vrot.slane %v385_v7, 2  ;;  %v393_v10 = vrot.slane %v392_v8, 2 }
  0x43   : > { %v387_v11 = vmax.f32 %v385_v7, %v386_v9  ;;  %v394_v12 = vmax.f32 %v392_v8, %v393_v10  ;;  %v460_v9 = vsel %vm452_vm7, %v459_v6, %v451_v5  ;;  %v968_v10 = vmov 0  }
  0x45   : > { %v388_v13 = vrot.slane %v387_v11, 1  ;;  %v395_v14 = vrot.slane %v394_v12, 1 }
  0x47   : > { %v389_v15 = vmax.f32 %v387_v11, %v388_v13  ;;  %v396_v16 = vmax.f32 %v394_v12, %v395_v14  ;;  %v506_v11 = vsel %vm505_vm10, 1, %v968_v10 }
  0x49   : > { %v399_v17 = vrot.slane %v396_v16, 4  ;;  %v508_v16 = vperm.slane %v506_v11, 1 }
  0x4b   : > { %v400_v18 = vsel %vm382_vm0, %v389_v15, %v399_v17  ;;  %v507_v15 = vperm.slane %v506_v11, 0  ;;  %vm510_vm12 = vcmp.ne.s32.totalorder %v508_v16, 0 }
  0x4c   : > { %v402_v19 = vsub.f32 %v373_v0, %v400_v18 }
  0x4d   : > { %vm509_vm11 = vcmp.ne.s32.totalorder %v507_v15, 0 }
  0x4e   : > { %v403_v20 = vmul.f32 1.442695, %v402_v19 }
  0x50   : > { %796 = vpow2.f32 %v403_v20 }
  0x56   : > { %v797_v21 = vpop.eup %796 }
  0x57   : > { %406 = vst [vmem:[#allocation1] ss:$2 sm:$0xff] %v797_v21  ;;  %v426_v40 = vrot.slane %v797_v21, 3 }
  0x59   : > { %v428_v44 = vsel %vm427_vm1, %v797_v21, %v426_v40 }
  0x5a   : > { %v430_v45 = vsel %vm425_vm2, %v428_v44, 0.0 }
  0x5e   : > { %v407_v22 = vld.sshfl [vmem:[#allocation1] sm:$0xff pattern:$0x75316420]  ;;  %v408_v23 = vld.sshfl [vmem:[#allocation1 + $0x8] sm:$0xff pattern:$0x75316420] }
  0x5f   : > { %v411_v24 = vsel %vm382_vm0, %v407_v22, 0.0  ;;  %v418_v25 = vsel %vm382_vm0, %v408_v23, 0.0  ;;  %435 = vst [vmem:[#allocation1] sm:$0xff] %v797_v21  ;;  %v969_v23 = vmov 0.0  }
  0x60   : > { %v412_v26 = vrot.slane %v411_v24, 4  ;;  %v419_v27 = vrot.slane %v418_v25, 4  ;;  %371 = vst.msk [vmem:[#allocation2] sm:$0x1] %vm370_vm13, %v969_v23 }
  0x61   : > { %372 = vst.msk [vmem:[#allocation3] sm:$0x1] %vm370_vm13, %v969_v23 }
  0x62   : > { %v413_v28 = vadd.f32 %v412_v26, %v411_v24  ;;  %v420_v29 = vadd.f32 %v419_v27, %v418_v25  ;;  %v513_v24 = vsel %vm509_vm11, 1.0, %v969_v23  ;;  %v514_v25 = vsel %vm510_vm12, 1.0, %v969_v23 }
  0x63   : > { %v525_v26 = vsel %vm427_vm1, %v513_v24, 0.0  ;;  %v526_v27 = vsel %vm427_vm1, %v514_v25, 0.0 }
  0x64   : > { %v414_v30 = vrot.slane %v413_v28, 2  ;;  %v421_v31 = vrot.slane %v420_v29, 2 }
  0x66   : > { %v415_v32 = vadd.f32 %v414_v30, %v413_v28  ;;  %v422_v33 = vadd.f32 %v421_v31, %v420_v29  ;;  %v437_v34 = vld [vmem:[#allocation1 + $0x1] ss:$4 sm:$0xff]  ;;  %v527_v28 = vadd.f32 %v526_v27, %v525_v26 }
  0x67   : > { %444 = vst [vmem:[#allocation1] sm:$0xff] %v797_v21  ;;  %v439_v48 = vsel %vm434_vm3, %v437_v34, %v430_v45  ;;  %v515_v29 = vld [vmem:[#allocation2] sm:$0x1] }
  0x68   : > { %v416_v35 = vrot.slane %v415_v32, 1  ;;  %v423_v36 = vrot.slane %v422_v33, 1 }
  0x6a   : > { %v417_v37 = vadd.f32 %v416_v35, %v415_v32  ;;  %v424_v38 = vadd.f32 %v423_v36, %v422_v33  ;;  %v524_v32 = vld [vmem:[#allocation3] sm:$0x1] }
  0x6c   : > { %v463_v39 = vrot.slane %v424_v38, 7 }
  0x6e   : > { %v446_v42 = vld [vmem:[#allocation1 + $0x2] ss:$4 sm:$0xff]  ;;  %v464_v43 = vsel %vm427_vm1, %v417_v37, %v463_v39 }
  0x6f   : > { %453 = vst [vmem:[#allocation1] sm:$0xff] %v797_v21  ;;  %798 = vrcp.f32 %v464_v43  ;;  %v477_v49 = vand.u32 2147483648, %v464_v43  ;;  %vm471_vm5 = vweird.f32 %v464_v43  ;;  %v475_v51 = vand.u32 2147483647, %v464_v43 }
  0x70   : > { %v448_v52 = vsel %vm443_vm4, %v446_v42, %v439_v48 }
  0x71   : > { %v478_v55 = vor.u32 1.1754944e-38, %v477_v49  ;;  %vm476_vm9 = vcmp.eq.f32.partialorder %v475_v51, 8.507059e+37 }
  0x75   : > { %v799_v46 = vpop.eup %798 }
  0x76   : > { %v467_v47 = vmul.f32 %v799_v46, %v464_v43  ;;  %vm472_vm6 = vweird.f32 %v799_v46  ;;  %v455_v53 = vld [vmem:[#allocation1 + $0x3] ss:$4 sm:$0xff] }
  0x77   : > { %vm473_vm8 = vmor %vm471_vm5, %vm472_vm6  ;;  %v457_v58 = vsel %vm452_vm7, %v455_v53, %v448_v52 }
  0x78   : > { %v468_v50 = vsub.f32 1.0, %v467_v47 }
  0x7a   : > { %v469_v54 = vmul.f32 %v799_v46, %v468_v50 }
  0x7c   : > { %v470_v56 = vadd.f32 %v799_v46, %v469_v54 }
  0x7e   : > { %v474_v59 = vsel %vm473_vm8, %v799_v46, %v470_v56 }
  0x7f   : > { %v479_v60 = vsel %vm476_vm9, %v478_v55, %v474_v59 }
  0x80   : > { %v480_v63 = vmul.f32 %v479_v60, %v457_v58 }
  0x82   : > { %v481_v0 = vadd.f32 1e-06, %v480_v63 }
  0x84   : > { %800 = vlog2.f32 %v481_v0  ;;  %v485_v3 = vsub.f32 1.0, %v481_v0 }
  0x86   : > { %v486_v7 = vmul.f32 %v485_v3, %v485_v3 }
  0x88   : > { %v487_v13 = vsub.f32 0.0, %v486_v7 }
  0x8a   : > { %v801_v8 = vpop.eup %800 }
  0x8b   : > { %v483_v12 = vmul.f32 0.6931472, %v801_v8 }
  0x8d   : > { %v484_v14 = vmul.f32 %v483_v12, %v460_v9 }
  0x8f   : > { %v488_v17 = vmul.f32 %v487_v13, %v484_v14 }
  0x91   : > { %v499_v18 = vperm.slane %v488_v17, 0  ;;  %v500_v19 = vperm.slane %v488_v17, 1 }
  0x93   : > { %v516_v20 = vsel %vm427_vm1, %v499_v18, 0.0  ;;  %v517_v21 = vsel %vm427_vm1, %v500_v19, 0.0 }
  0x94   : > { %v518_v22 = vadd.f32 %v517_v21, %v516_v20 }
  0x96   : > { %519 = vadd.xlane.f32.xlu0 %v518_v22 }
  0x9e   : > { %528 = vadd.xlane.f32.xlu0 %v527_v28 }
 0x109   : > { %v520_v30 = vpop.xlane.xlu0 %519 }
 0x10a   : > { %v521_v31 = vadd.f32 %v520_v30, %v515_v29 }
 0x10c   : > { %523 = vst.msk [vmem:[#allocation2] sm:$0x1] %vm370_vm13, %v521_v31 }
 0x111   : > { %v529_v33 = vpop.xlane.xlu0 %528 }
 0x112   : > { %v530_v34 = vadd.f32 %v529_v33, %v524_v32 }
 0x113   : > { %v535_v35 = vld [vmem:[#allocation2] sm:$0x1] }
 0x114   : > { %v536_v36 = vmul.f32 0.00390625, %v535_v35  ;;  %531 = vst.msk [vmem:[#allocation3] sm:$0x1] %vm370_vm13, %v530_v34 }
 0x116   : > { %537 = vst.msk [vmem:[%s362_s8] sm:$0x1] %vm370_vm13, %v536_v36 }
 0x11b   : > { %v538_v37 = vld [vmem:[#allocation3] sm:$0x1] }
 0x11c   : > { %v539_v38 = vmul.f32 0.00390625, %v538_v37 }
 0x11e   : > { %540 = vst.msk [vmem:[%s365_s16] sm:$0x1] %vm370_vm13, %v539_v38 }
 0x11f PF: > { %s23_s23 = sadd.s32 1, %s965_s23   ;;  %s1203_s7 = sld [smem:[#allocation14_spill]] }
 0x120   : > { %p20_p2 = scmp.ge.s32.totalorder %s23_s23, 4   ;;  %s1204_s18 = smov %s949_s19 }
 0x121   : > { %s1205_s19 = smov %s953_s20  ;;  %s1206_s20 = smov %s1050_s6 }
 0x122   : > { %s1207_s21 = smov %s961_s22  ;;  %22 = sbr.rel (!%p20_p2) target bundleno = 11 (0xb), region = 128 }
 0x125   : > { %s1208_s22 = smov %s1203_s7 }
 0x127   :  { %570 = vsyncpa [#allocation5], 1 }
 0x128   :  { %572 = vsyncpa [#allocation5 + $0x1], 1 }
 0x129   :  { %573 = vsyncpa [#allocation8], 1 }
 0x12a   :  { %575 = vsyncpa [#allocation8 + $0x1], 1 }
 0x12b   :  { %576 = vsyncpa [#allocation6], 1 }
 0x12c   :  { %578 = vsyncpa [#allocation6 + $0x1], 1 }

</bundles_post_ra>
